<compile_context>
chip_gen: v7x
topology: tpu7x:2x2x1
jax: 0.10.0
libtpu: 0.0.40
codegen_flags: <defaults>
</compile_context>

<pallas_src>
import numpy as np
import jax
import jax.numpy as jnp
from jax.experimental import pallas as pl
from jax.experimental.pallas import tpu as pltpu


def _round_up(a: int, b: int) -> int:
    return pl.cdiv(a, b) * b


# ----------------------------- Pallas kernel ------------------------------ #
def _rot_apply_kernel(r_ref, x_ref, o_ref):
    # r_ref: (Nb, 9)      per-sample rotation coeffs, r_ref[n, 3*i + j] = R[n, i, j]
    # x_ref: (Nb, 3, Tt)  caller-native layout (sample, lead, time)
    # o_ref: (Nb, 3, Tt)
    #
    # out[:, i, :] = R[:,i,0]*x[:,0,:] + R[:,i,1]*x[:,1,:] + R[:,i,2]*x[:,2,:]
    # Pure VPU broadcast multiply-add: 3 sublane-strided plane loads, 5 VALU
    # ops and 1 store per output vreg -- filler under the HBM DMA on all
    # generations (incl. v7x's thinner per-TC compute slack).
    f32 = jnp.float32
    for i in range(3):                                     # static unroll (3 rows)
        c0 = r_ref[:, 3 * i + 0: 3 * i + 1]                # (Nb, 1) columns,
        c1 = r_ref[:, 3 * i + 1: 3 * i + 2]                # lane-broadcast into
        c2 = r_ref[:, 3 * i + 2: 3 * i + 3]                # the multiplies
        # Re-slice the lead planes per output row: keeps per-statement liveness
        # small (streams per-vreg) instead of holding 3 tile-sized f32 values
        # across all three output rows.
        y = (c0 * x_ref[:, 0, :].astype(f32)
             + c1 * x_ref[:, 1, :].astype(f32)
             + c2 * x_ref[:, 2, :].astype(f32))
        o_ref[:, i, :] = y.astype(o_ref.dtype)


# --------------------------- tile-size selection --------------------------- #
# VMEM sublane padding of a (3, tb) plane, per element dtype.
_SUBLANE_PAD = {4: 8, 2: 16, 1: 32}


def _pick_tiles(N: int, T: int, itemsize: int, tile_budget_bytes: int):
    """Pick (nb, tb) so in+out double-buffered tiles fit the VMEM budget."""
    pad_sub = _SUBLANE_PAD.get(itemsize, 8)
    # Time block: multiple of 128 (or the full extent), as large as possible.
    tb = min(_round_up(T, 128), 32768)
    while True:
        # in tile + out tile, each double-buffered, each (nb, 3->pad_sub, tb).
        per_sample = 4 * pad_sub * tb * itemsize
        nb_fit = max(1, tile_budget_bytes // per_sample)
        if nb_fit >= min(N, 8) or tb <= 512:
            break
        tb = max(512, _round_up(tb // 2, 128))
    if N <= nb_fit:
        nb = N                       # whole sample axis in one block (== full dim)
    else:
        nb = max(8, min((nb_fit // 8) * 8, _round_up(N, 8)))
    return int(nb), int(tb)


# --------------------------------- wrapper --------------------------------- #
def random_rotation_apply(rotations: jnp.ndarray, x: jnp.ndarray, *,
                          n_block: int | None = None,
                          t_block: int | None = None,
                          vmem_limit_bytes: int | None = None) -> jnp.ndarray:
    """Apply per-sample (N,3,3) rotations to (N,3,T) signals via Pallas."""
    N, C, T = x.shape
    assert C == 3 and rotations.shape == (N, 3, 3)
    itemsize = jnp.dtype(x.dtype).itemsize

    # Generation-aware VMEM budget (v7x has 64 MiB/TC, v5e/v6e 128 MiB).
    try:
        vmem_cap = int(pltpu.get_tpu_info().vmem_capacity_bytes)
    except Exception:
        vmem_cap = 64 * 1024 * 1024           # v7x-safe fallback
    if vmem_limit_bytes is None:
        vmem_limit_bytes = (vmem_cap * 3) // 4
    tile_budget = vmem_cap // 2               # pipeline buffers + headroom

    nb, tb = _pick_tiles(N, T, itemsize, tile_budget)
    if n_block is not None:
        nb = min(int(n_block), N)
    if t_block is not None:
        tb = min(_round_up(int(t_block), 128), _round_up(T, 128))
    # Coeff block (nb, 9): sublane dim nb must be a multiple of 8 or == N.
    assert nb == N or nb % 8 == 0, "sample block must equal N or be a multiple of 8"
    assert tb == T or tb % 128 == 0, "time block must equal T or be a multiple of 128"

    # Rotations flattened to (N, 9): contiguous reshape -> no HBM copy.
    rflat = rotations.reshape(N, 9).astype(jnp.float32)

    gn = pl.cdiv(N, nb)
    gt = pl.cdiv(T, tb)
    # Put the grid axis with more blocks first so the "parallel" megacore
    # sharding on v7x has work to split even when the other axis has extent 1.
    if gt >= gn:
        grid = (gt, gn)
        x_map = lambda t, n: (n, 0, t)
        r_map = lambda t, n: (n, 0)
    else:
        grid = (gn, gt)
        x_map = lambda n, t: (n, 0, t)
        r_map = lambda n, t: (n, 0)

    return pl.pallas_call(
        _rot_apply_kernel,
        out_shape=jax.ShapeDtypeStruct((N, 3, T), x.dtype),
        grid=grid,
        in_specs=[
            pl.BlockSpec((nb, 9), r_map),        # tiny per-sample coeff block
            pl.BlockSpec((nb, 3, tb), x_map),    # native (N,3,T) tiling
        ],
        out_specs=pl.BlockSpec((nb, 3, tb), x_map),
        compiler_params=pltpu.CompilerParams(
            dimension_semantics=("parallel", "parallel"),
            vmem_limit_bytes=int(vmem_limit_bytes)),
    )(rflat, x)


# -------------------- rotation-matrix construction (glue) ------------------ #
# TODO(synk): the random axis-order / random-angle draw (np.random.permutation
# + torch.rand in _get_rotations) is host-side RNG with no in-kernel
# equivalent; it is reproduced as deterministic numpy glue below.
def _rx(t):
    c, s = np.cos(t), np.sin(t)
    return np.array([[1, 0, 0], [0, c, -s], [0, s, c]], dtype=np.float64)


def _ry(t):
    c, s = np.cos(t), np.sin(t)
    return np.array([[c, 0, s], [0, 1, 0], [-s, 0, c]], dtype=np.float64)


def _rz(t):
    c, s = np.cos(t), np.sin(t)
    return np.array([[c, -s, 0], [s, c, 0], [0, 0, 1]], dtype=np.float64)


_AXIS_ROTS = (_rx, _ry, _rz)


def make_random_rotations(N: int, max_angle_deg: float, seed: int = 0) -> jnp.ndarray:
    """Deterministic stand-in for RandomRotation._get_rotations."""
    rng = np.random.default_rng(seed)
    max_angle = np.deg2rad(max_angle_deg)
    angle_range = 2.0 * max_angle
    mats = []
    for _ in range(N):
        perm = rng.permutation(3)                              # random axis order
        thetas = rng.random(3) * angle_range - max_angle       # U[-max, +max)
        m = (_AXIS_ROTS[perm[0]](thetas[0])
             @ _AXIS_ROTS[perm[1]](thetas[1])
             @ _AXIS_ROTS[perm[2]](thetas[2]))
        mats.append(m)
    return jnp.asarray(np.stack(mats), dtype=jnp.float32)


# ---------------------------------- main ----------------------------------- #
if __name__ == "__main__":
    max_angle_deg = 15.0

    # Case 1: default (auto) tiling — single block, native layout, no copies.
    N, C, T = 8, 3, 1024
    x = jax.random.normal(jax.random.PRNGKey(0), (N, C, T), dtype=jnp.float32)
    rotations = make_random_rotations(N, max_angle_deg, seed=0)
    ref = jnp.einsum("nij,njt->nit", rotations, x)

    out = jax.block_until_ready(random_rotation_apply(rotations, x))
    np.testing.assert_allclose(np.asarray(out), np.asarray(ref),
                               rtol=1e-5, atol=1e-5)

    # Case 2: forced small blocks — multi-step time grid (time axis leads grid).
    out_tiled = jax.block_until_ready(
        random_rotation_apply(rotations, x, n_block=8, t_block=256))
    np.testing.assert_allclose(np.asarray(out_tiled), np.asarray(ref),
                               rtol=1e-5, atol=1e-5)

    # Case 3: N not a multiple of 8 (single sample block equal to the full axis).
    N2, T2 = 5, 384
    x2 = jax.random.normal(jax.random.PRNGKey(1), (N2, 3, T2), dtype=jnp.float32)
    rot2 = make_random_rotations(N2, max_angle_deg, seed=1)
    out2 = jax.block_until_ready(random_rotation_apply(rot2, x2))
    ref2 = jnp.einsum("nij,njt->nit", rot2, x2)
    np.testing.assert_allclose(np.asarray(out2), np.asarray(ref2),
                               rtol=1e-5, atol=1e-5)

    print("KERNEL_OK")
</pallas_src>

<mosaic_0001>
module attributes {stable_mosaic.version = 11 : i64} {
  func.func @_rot_apply_kernel(%arg0: i32, %arg1: i32, %arg2: memref<8x9xf32, #tpu.memory_space<vmem>>, %arg3: memref<8x3x1024xf32, #tpu.memory_space<vmem>>, %arg4: memref<8x3x1024xf32, #tpu.memory_space<vmem>>) attributes {dimension_semantics = [#tpu.dimension_semantics<parallel>, #tpu.dimension_semantics<parallel>], iteration_bounds = array<i64: 1, 1>, scalar_prefetch = 0 : i64, scratch_operands = 0 : i64, tpu.core_type = #tpu.core_type<tc>, window_params = [{transform_indices = @transform_0, window_bounds = array<i64: 8, 9>}, {transform_indices = @transform_1, window_bounds = array<i64: 8, 3, 1024>}, {transform_indices = @transform_2, window_bounds = array<i64: 8, 3, 1024>}]} {
    %c0 = arith.constant 0 : index
    %c0_0 = arith.constant 0 : index
    %0 = vector.load %arg2[%c0, %c0_0] : memref<8x9xf32, #tpu.memory_space<vmem>>, vector<8x1xf32>
    %c0_1 = arith.constant 0 : index
    %c1 = arith.constant 1 : index
    %1 = vector.load %arg2[%c0_1, %c1] : memref<8x9xf32, #tpu.memory_space<vmem>>, vector<8x1xf32>
    %c0_2 = arith.constant 0 : index
    %c2 = arith.constant 2 : index
    %2 = vector.load %arg2[%c0_2, %c2] : memref<8x9xf32, #tpu.memory_space<vmem>>, vector<8x1xf32>
    %c0_3 = arith.constant 0 : index
    %c0_4 = arith.constant 0 : index
    %c0_5 = arith.constant 0 : index
    %3 = vector.load %arg3[%c0_3, %c0_4, %c0_5] : memref<8x3x1024xf32, #tpu.memory_space<vmem>>, vector<8x1x1024xf32>
    %4 = vector.shape_cast %3 : vector<8x1x1024xf32> to vector<8x1024xf32>
    %5 = vector.broadcast %0 : vector<8x1xf32> to vector<8x1024xf32>
    %6 = arith.mulf %5, %4 : vector<8x1024xf32>
    %c0_6 = arith.constant 0 : index
    %c1_7 = arith.constant 1 : index
    %c0_8 = arith.constant 0 : index
    %7 = vector.load %arg3[%c0_6, %c1_7, %c0_8] : memref<8x3x1024xf32, #tpu.memory_space<vmem>>, vector<8x1x1024xf32>
    %8 = vector.shape_cast %7 : vector<8x1x1024xf32> to vector<8x1024xf32>
    %9 = vector.broadcast %1 : vector<8x1xf32> to vector<8x1024xf32>
    %10 = arith.mulf %9, %8 : vector<8x1024xf32>
    %11 = arith.addf %6, %10 : vector<8x1024xf32>
    %c0_9 = arith.constant 0 : index
    %c2_10 = arith.constant 2 : index
    %c0_11 = arith.constant 0 : index
    %12 = vector.load %arg3[%c0_9, %c2_10, %c0_11] : memref<8x3x1024xf32, #tpu.memory_space<vmem>>, vector<8x1x1024xf32>
    %13 = vector.shape_cast %12 : vector<8x1x1024xf32> to vector<8x1024xf32>
    %14 = vector.broadcast %2 : vector<8x1xf32> to vector<8x1024xf32>
    %15 = arith.mulf %14, %13 : vector<8x1024xf32>
    %16 = arith.addf %11, %15 : vector<8x1024xf32>
    %c0_12 = arith.constant 0 : index
    %c0_13 = arith.constant 0 : index
    %c0_14 = arith.constant 0 : index
    %17 = vector.load %arg4[%c0_12, %c0_13, %c0_14] : memref<8x3x1024xf32, #tpu.memory_space<vmem>>, vector<8x1x1024xf32>
    %18 = vector.shape_cast %17 : vector<8x1x1024xf32> to vector<8x1024xf32>
    %19 = vector.shape_cast %16 : vector<8x1024xf32> to vector<8x1x1024xf32>
    tpu.vector_store %arg4[%c0_12, %c0_13, %c0_14], %19 {strides = array<i32>} : memref<8x3x1024xf32, #tpu.memory_space<vmem>>, vector<8x1x1024xf32>,
    %c0_15 = arith.constant 0 : index
    %c3 = arith.constant 3 : index
    %20 = vector.load %arg2[%c0_15, %c3] : memref<8x9xf32, #tpu.memory_space<vmem>>, vector<8x1xf32>
    %c0_16 = arith.constant 0 : index
    %c4 = arith.constant 4 : index
    %21 = vector.load %arg2[%c0_16, %c4] : memref<8x9xf32, #tpu.memory_space<vmem>>, vector<8x1xf32>
    %c0_17 = arith.constant 0 : index
    %c5 = arith.constant 5 : index
    %22 = vector.load %arg2[%c0_17, %c5] : memref<8x9xf32, #tpu.memory_space<vmem>>, vector<8x1xf32>
    %c0_18 = arith.constant 0 : index
    %c0_19 = arith.constant 0 : index
    %c0_20 = arith.constant 0 : index
    %23 = vector.load %arg3[%c0_18, %c0_19, %c0_20] : memref<8x3x1024xf32, #tpu.memory_space<vmem>>, vector<8x1x1024xf32>
    %24 = vector.shape_cast %23 : vector<8x1x1024xf32> to vector<8x1024xf32>
    %25 = vector.broadcast %20 : vector<8x1xf32> to vector<8x1024xf32>
    %26 = arith.mulf %25, %24 : vector<8x1024xf32>
    %c0_21 = arith.constant 0 : index
    %c1_22 = arith.constant 1 : index
    %c0_23 = arith.constant 0 : index
    %27 = vector.load %arg3[%c0_21, %c1_22, %c0_23] : memref<8x3x1024xf32, #tpu.memory_space<vmem>>, vector<8x1x1024xf32>
    %28 = vector.shape_cast %27 : vector<8x1x1024xf32> to vector<8x1024xf32>
    %29 = vector.broadcast %21 : vector<8x1xf32> to vector<8x1024xf32>
    %30 = arith.mulf %29, %28 : vector<8x1024xf32>
    %31 = arith.addf %26, %30 : vector<8x1024xf32>
    %c0_24 = arith.constant 0 : index
    %c2_25 = arith.constant 2 : index
    %c0_26 = arith.constant 0 : index
    %32 = vector.load %arg3[%c0_24, %c2_25, %c0_26] : memref<8x3x1024xf32, #tpu.memory_space<vmem>>, vector<8x1x1024xf32>
    %33 = vector.shape_cast %32 : vector<8x1x1024xf32> to vector<8x1024xf32>
    %34 = vector.broadcast %22 : vector<8x1xf32> to vector<8x1024xf32>
    %35 = arith.mulf %34, %33 : vector<8x1024xf32>
    %36 = arith.addf %31, %35 : vector<8x1024xf32>
    %c0_27 = arith.constant 0 : index
    %c1_28 = arith.constant 1 : index
    %c0_29 = arith.constant 0 : index
    %37 = vector.load %arg4[%c0_27, %c1_28, %c0_29] : memref<8x3x1024xf32, #tpu.memory_space<vmem>>, vector<8x1x1024xf32>
    %38 = vector.shape_cast %37 : vector<8x1x1024xf32> to vector<8x1024xf32>
    %39 = vector.shape_cast %36 : vector<8x1024xf32> to vector<8x1x1024xf32>
    tpu.vector_store %arg4[%c0_27, %c1_28, %c0_29], %39 {strides = array<i32>} : memref<8x3x1024xf32, #tpu.memory_space<vmem>>, vector<8x1x1024xf32>,
    %c0_30 = arith.constant 0 : index
    %c6 = arith.constant 6 : index
    %40 = vector.load %arg2[%c0_30, %c6] : memref<8x9xf32, #tpu.memory_space<vmem>>, vector<8x1xf32>
    %c0_31 = arith.constant 0 : index
    %c7 = arith.constant 7 : index
    %41 = vector.load %arg2[%c0_31, %c7] : memref<8x9xf32, #tpu.memory_space<vmem>>, vector<8x1xf32>
    %c0_32 = arith.constant 0 : index
    %c8 = arith.constant 8 : index
    %42 = vector.load %arg2[%c0_32, %c8] : memref<8x9xf32, #tpu.memory_space<vmem>>, vector<8x1xf32>
    %c0_33 = arith.constant 0 : index
    %c0_34 = arith.constant 0 : index
    %c0_35 = arith.constant 0 : index
    %43 = vector.load %arg3[%c0_33, %c0_34, %c0_35] : memref<8x3x1024xf32, #tpu.memory_space<vmem>>, vector<8x1x1024xf32>
    %44 = vector.shape_cast %43 : vector<8x1x1024xf32> to vector<8x1024xf32>
    %45 = vector.broadcast %40 : vector<8x1xf32> to vector<8x1024xf32>
    %46 = arith.mulf %45, %44 : vector<8x1024xf32>
    %c0_36 = arith.constant 0 : index
    %c1_37 = arith.constant 1 : index
    %c0_38 = arith.constant 0 : index
    %47 = vector.load %arg3[%c0_36, %c1_37, %c0_38] : memref<8x3x1024xf32, #tpu.memory_space<vmem>>, vector<8x1x1024xf32>
    %48 = vector.shape_cast %47 : vector<8x1x1024xf32> to vector<8x1024xf32>
    %49 = vector.broadcast %41 : vector<8x1xf32> to vector<8x1024xf32>
    %50 = arith.mulf %49, %48 : vector<8x1024xf32>
    %51 = arith.addf %46, %50 : vector<8x1024xf32>
    %c0_39 = arith.constant 0 : index
    %c2_40 = arith.constant 2 : index
    %c0_41 = arith.constant 0 : index
    %52 = vector.load %arg3[%c0_39, %c2_40, %c0_41] : memref<8x3x1024xf32, #tpu.memory_space<vmem>>, vector<8x1x1024xf32>
    %53 = vector.shape_cast %52 : vector<8x1x1024xf32> to vector<8x1024xf32>
    %54 = vector.broadcast %42 : vector<8x1xf32> to vector<8x1024xf32>
    %55 = arith.mulf %54, %53 : vector<8x1024xf32>
    %56 = arith.addf %51, %55 : vector<8x1024xf32>
    %c0_42 = arith.constant 0 : index
    %c2_43 = arith.constant 2 : index
    %c0_44 = arith.constant 0 : index
    %57 = vector.load %arg4[%c0_42, %c2_43, %c0_44] : memref<8x3x1024xf32, #tpu.memory_space<vmem>>, vector<8x1x1024xf32>
    %58 = vector.shape_cast %57 : vector<8x1x1024xf32> to vector<8x1024xf32>
    %59 = vector.shape_cast %56 : vector<8x1024xf32> to vector<8x1x1024xf32>
    tpu.vector_store %arg4[%c0_42, %c2_43, %c0_44], %59 {strides = array<i32>} : memref<8x3x1024xf32, #tpu.memory_space<vmem>>, vector<8x1x1024xf32>,
    return
  }
  func.func @transform_0(%arg0: i32, %arg1: i32) -> (i32, i32) {
    %c0_i32 = arith.constant 0 : i32
    %c0_i32_0 = arith.constant 0 : i32
    return %arg1, %c0_i32 : i32, i32
  }
  func.func @transform_1(%arg0: i32, %arg1: i32) -> (i32, i32, i32) {
    %c0_i32 = arith.constant 0 : i32
    %c0_i32_0 = arith.constant 0 : i32
    return %arg1, %c0_i32, %arg0 : i32, i32, i32
  }
  func.func @transform_2(%arg0: i32, %arg1: i32) -> (i32, i32, i32) {
    %c0_i32 = arith.constant 0 : i32
    %c0_i32_0 = arith.constant 0 : i32
    return %arg1, %c0_i32, %arg0 : i32, i32, i32
  }
}

</mosaic_0001>

<bundles_post_ra>
// kernel: tpu_custom_call.1
= control target key start
LH: loop header
LB: loop body
LE: loop exit
PB: predicated region body
PF: predicated region fallthrough
CT: control target
= control target key end

     0   :  { %v2254_v0 = vmov 3   ;;  %v2255_v1 = vmov 0   ;;  %v2256_v3 = vmov 4   ;;  %v2257_v4 = vmov 1   ;;  %s3352_s0 = inlined_call_operand.vmem [shape: f32[8,9], index: 0, kind: input, shape index: {}]   ;;  %s3353_s1 = inlined_call_operand.vmem [shape: f32[8,3,1024], index: 1, kind: input, shape index: {}]   ;;  %s3354_s2 = inlined_call_operand.vmem [shape: f32[8,3,1024], index: 2, kind: output, shape index: {}]  }
   0x1   :  { %2247 = vset.pattern.permute.xlu1 %v2254_v0  ;;  %2245 = vset.pattern.permute.xlu0 %v2255_v1  ;;  %v735_v2 = vld [vmem:[%s3352_s0] sm:$0xff]  ;;  %v2258_v5 = vmov 6   ;;  %v2259_v6 = vmov 7   ;;  %v2260_v7 = vmov 2   ;;  %v2261_v8 = vmov 8  }
   0x2   :  { %746 = vperm.xlu1 %2247, %v735_v2   ;;  %29 = vperm.xlu0 %2245, %v735_v2   ;;  %v2262_v9 = vmov 5   ;;  %v2263_v10 = vmov 1966171168   ;;  %v51_v12 = vlaneseq  ;;  %v736_v15 = vld [vmem:[%s3353_s1] ss:$4 sm:$0xff] }
   0x3   :  { %v49_v11 = vunpack.c.l.s4 %v2263_v10  ;;  %v2173_v16 = vld [vmem:[%s3353_s1 + $0x20] ss:$4 sm:$0xff] }
   0x4   :  { %v52_v14 = vshrl.u32 %v51_v12, 7  ;;  %v2174_v17 = vld [vmem:[%s3353_s1 + $0x40] ss:$4 sm:$0xff]  ;;  %v757_v23 = vcombine.low %v736_v15, %v2173_v16  ;;  %v758_v25 = vcombine.high %v736_v15, %v2173_v16  ;;  %v2180_v16 = vld [vmem:[%s3353_s1 + $0x1] ss:$4 sm:$0xff] }
   0x5   :  { %v50_v13 = vunpack.c.0.s8 %v49_v11  ;;  %v2175_v18 = vld [vmem:[%s3353_s1 + $0x60] ss:$4 sm:$0xff] }
   0x6   :  { %2248 = vset.pattern.permute.xlu1 %v2256_v3  ;;  %2246 = vset.pattern.permute.xlu0 %v2257_v4  ;;  %v2176_v19 = vld [vmem:[%s3353_s1 + $0x80] ss:$4 sm:$0xff]  ;;  %v759_v26 = vcombine.low %v2174_v17, %v2175_v18  ;;  %v760_v27 = vcombine.high %v2174_v17, %v2175_v18  ;;  %v2181_v17 = vld [vmem:[%s3353_s1 + $0x21] ss:$4 sm:$0xff] }
   0x7   :  { %918 = vperm.xlu1 %2248, %v735_v2   ;;  %209 = vperm.xlu0 %2246, %v735_v2   ;;  %v2177_v20 = vld [vmem:[%s3353_s1 + $0xa0] ss:$4 sm:$0xff]  ;;  %v2306_v24 = vsub.s32 %v50_v13, %v52_v14 }
   0x8   :  { %v2178_v21 = vld [vmem:[%s3353_s1 + $0xc0] ss:$4 sm:$0xff]  ;;  %v761_v28 = vcombine.low %v2176_v19, %v2177_v20  ;;  %v762_v29 = vcombine.high %v2176_v19, %v2177_v20 }
   0x9   :  { %v2179_v22 = vld [vmem:[%s3353_s1 + $0xe0] ss:$4 sm:$0xff]  ;;  %v771_v32 = vrot.slane %v757_v23, %v2306_v24  ;;  %v778_v33 = vrot.slane %v758_v25, %v2306_v24  ;;  %v785_v34 = vrot.slane %v759_v26, %v2306_v24  ;;  %v792_v35 = vrot.slane %v760_v27, %v2306_v24  ;;  %v2183_v23 = vld [vmem:[%s3353_s1 + $0x61] ss:$4 sm:$0xff] }
   0xa   :  { %v763_v30 = vcombine.low %v2178_v21, %v2179_v22  ;;  %v764_v31 = vcombine.high %v2178_v21, %v2179_v22  ;;  %v799_v36 = vrot.slane %v761_v28, %v2306_v24  ;;  %v806_v37 = vrot.slane %v762_v29, %v2306_v24  ;;  %v12_v40 = vld [vmem:[%s3353_s1] ss:$4 sm:$0xff]  ;;  %v2182_v22 = vld [vmem:[%s3353_s1 + $0x41] ss:$4 sm:$0xff] }
   0xb   :  { %2249 = vset.pattern.permute.xlu1 %v2258_v5  ;;  %2250 = vset.pattern.permute.xlu0 %v2259_v6  ;;  %v2143_v41 = vld [vmem:[%s3353_s1 + $0x20] ss:$4 sm:$0xff]  ;;  %v821_v45 = vcombine.low %v771_v32, %v785_v34  ;;  %v823_v46 = vcombine.low %v778_v33, %v792_v35  ;;  %v822_v50 = vcombine.high %v771_v32, %v785_v34  ;;  %v2184_v25 = vld [vmem:[%s3353_s1 + $0x81] ss:$4 sm:$0xff] }
   0xc   :  { %1448 = vperm.xlu1 %2249, %v735_v2   ;;  %1620 = vperm.xlu0 %2250, %v735_v2   ;;  %v813_v38 = vrot.slane %v763_v30, %v2306_v24  ;;  %v820_v39 = vrot.slane %v764_v31, %v2306_v24  ;;  %v2144_v42 = vld [vmem:[%s3353_s1 + $0x40] ss:$4 sm:$0xff]  ;;  %v40_v54 = vcombine.low %v12_v40, %v2143_v41  ;;  %v2185_v30 = vld [vmem:[%s3353_s1 + $0xa1] ss:$4 sm:$0xff] }
   0xd   :  { %v2145_v43 = vld [vmem:[%s3353_s1 + $0x60] ss:$4 sm:$0xff]  ;;  %v41_v55 = vcombine.high %v12_v40, %v2143_v41  ;;  %v824_v62 = vcombine.high %v778_v33, %v792_v35  ;;  %v2341_v0 = vrot.slane %v821_v45, %v2306_v24  ;;  %v2344_v1 = vrot.slane %v823_v46, %v2306_v24  ;;  %v2186_v31 = vld [vmem:[%s3353_s1 + $0xc1] ss:$4 sm:$0xff] }
   0xe   :  { %v2146_v44 = vld [vmem:[%s3353_s1 + $0x80] ss:$4 sm:$0xff]  ;;  %v825_v51 = vcombine.low %v799_v36, %v813_v38  ;;  %v826_v52 = vcombine.high %v799_v36, %v813_v38  ;;  %v827_v53 = vcombine.low %v806_v37, %v820_v39  ;;  %v42_v56 = vcombine.low %v2144_v42, %v2145_v43  ;;  %v2187_v32 = vld [vmem:[%s3353_s1 + $0xe1] ss:$4 sm:$0xff] }
   0xf   :  { %v2147_v47 = vld [vmem:[%s3353_s1 + $0xa0] ss:$4 sm:$0xff]  ;;  %v43_v57 = vcombine.high %v2144_v42, %v2145_v43  ;;  %v828_v63 = vcombine.high %v806_v37, %v820_v39  ;;  %v54_v6 = vrot.slane %v40_v54, %v2306_v24  ;;  %v2367_v14 = vrot.slane %v824_v62, %v2306_v24  ;;  %v2151_v62 = vld [vmem:[%s3353_s1 + $0x21] ss:$4 sm:$0xff] }
  0x10   :  { %2251 = vset.pattern.permute.xlu1 %v2260_v7  ;;  %2253 = vset.pattern.permute.xlu0 %v2261_v8  ;;  %v2148_v48 = vld [vmem:[%s3353_s1 + $0xc0] ss:$4 sm:$0xff]  ;;  %v44_v58 = vcombine.low %v2146_v44, %v2147_v47  ;;  %v45_v59 = vcombine.high %v2146_v44, %v2147_v47  ;;  %v2350_v3 = vrot.slane %v825_v51, %v2306_v24 }
  0x11   :  { %397 = vperm.xlu1 %2251, %v735_v2   ;;  %1800 = vperm.xlu0 %2253, %v735_v2   ;;  %v2149_v49 = vld [vmem:[%s3353_s1 + $0xe0] ss:$4 sm:$0xff]  ;;  %v2353_v4 = vrot.slane %v827_v53, %v2306_v24  ;;  %v2356_v5 = vrot.slane %v826_v52, %v2306_v24  ;;  %v61_v7 = vrot.slane %v41_v55, %v2306_v24 }
  0x12   :  { %v46_v60 = vcombine.low %v2148_v48, %v2149_v49  ;;  %v47_v61 = vcombine.high %v2148_v48, %v2149_v49  ;;  %v68_v8 = vrot.slane %v42_v56, %v2306_v24  ;;  %v82_v10 = vrot.slane %v44_v58, %v2306_v24 }
  0x13   :  { %v89_v11 = vrot.slane %v45_v59, %v2306_v24  ;;  %v2370_v15 = vrot.slane %v828_v63, %v2306_v24  ;;  %v929_v37 = vcombine.low %v2180_v16, %v2181_v17  ;;  %v930_v38 = vcombine.high %v2180_v16, %v2181_v17 }
  0x14   :  { %v96_v12 = vrot.slane %v46_v60, %v2306_v24  ;;  %v103_v13 = vrot.slane %v47_v61, %v2306_v24  ;;  %v104_v28 = vcombine.low %v54_v6, %v68_v8  ;;  %v105_v33 = vcombine.high %v54_v6, %v68_v8  ;;  %v2150_v61 = vld [vmem:[%s3353_s1 + $0x1] ss:$4 sm:$0xff] }
  0x15   :  { %2252 = vset.pattern.permute.xlu1 %v2262_v9  ;;  %v75_v9 = vrot.slane %v43_v57, %v2306_v24  ;;  %v931_v39 = vcombine.low %v2182_v22, %v2183_v23  ;;  %v932_v40 = vcombine.high %v2182_v22, %v2183_v23  ;;  %v933_v41 = vcombine.low %v2184_v25, %v2185_v30  ;;  %v2155_v22 = vld [vmem:[%s3353_s1 + $0xa1] ss:$4 sm:$0xff] }
  0x16   :  { %1098 = vperm.xlu1 %2252, %v735_v2   ;;  %v2347_v2 = vrot.slane %v822_v50, %v2306_v24  ;;  %v108_v34 = vcombine.low %v82_v10, %v96_v12  ;;  %v109_v35 = vcombine.high %v82_v10, %v96_v12  ;;  %v110_v36 = vcombine.low %v89_v11, %v103_v13  ;;  %v2153_v10 = vld [vmem:[%s3353_s1 + $0x61] ss:$4 sm:$0xff] }
  0x17   :  { %v106_v29 = vcombine.low %v61_v7, %v75_v9  ;;  %v934_v42 = vcombine.high %v2184_v25, %v2185_v30  ;;  %v935_v43 = vcombine.low %v2186_v31, %v2187_v32  ;;  %v936_v44 = vcombine.high %v2186_v31, %v2187_v32  ;;  %v2156_v23 = vld [vmem:[%s3353_s1 + $0xc1] ss:$4 sm:$0xff] }
  0x18   :  { %v107_v45 = vcombine.high %v61_v7, %v75_v9  ;;  %v111_v46 = vcombine.high %v89_v11, %v103_v13  ;;  %v2409_v47 = vrot.slane %v104_v28, %v2306_v24  ;;  %v2415_v49 = vrot.slane %v105_v33, %v2306_v24  ;;  %v2152_v9 = vld [vmem:[%s3353_s1 + $0x41] ss:$4 sm:$0xff] }
  0x19   :  { %v2412_v48 = vrot.slane %v106_v29, %v2306_v24  ;;  %v2418_v50 = vrot.slane %v108_v34, %v2306_v24  ;;  %v2421_v51 = vrot.slane %v110_v36, %v2306_v24  ;;  %v2424_v52 = vrot.slane %v109_v35, %v2306_v24  ;;  %v2154_v11 = vld [vmem:[%s3353_s1 + $0x81] ss:$4 sm:$0xff] }
  0x1a   :  { %v943_v53 = vrot.slane %v929_v37, %v2306_v24  ;;  %v950_v54 = vrot.slane %v930_v38, %v2306_v24  ;;  %v957_v55 = vrot.slane %v931_v39, %v2306_v24  ;;  %v964_v56 = vrot.slane %v932_v40, %v2306_v24  ;;  %v2157_v25 = vld [vmem:[%s3353_s1 + $0xe1] ss:$4 sm:$0xff] }
  0x1b   :  { %v971_v57 = vrot.slane %v933_v41, %v2306_v24  ;;  %v978_v58 = vrot.slane %v934_v42, %v2306_v24  ;;  %v985_v59 = vrot.slane %v935_v43, %v2306_v24  ;;  %v992_v60 = vrot.slane %v936_v44, %v2306_v24 }
  0x1c   :  { %v2445_v7 = vrot.slane %v107_v45, %v2306_v24  ;;  %v2448_v8 = vrot.slane %v111_v46, %v2306_v24  ;;  %v993_v30 = vcombine.low %v943_v53, %v957_v55  ;;  %v995_v31 = vcombine.low %v950_v54, %v964_v56 }
  0x1d   :  { %v997_v32 = vcombine.low %v971_v57, %v985_v59  ;;  %v999_v33 = vcombine.low %v978_v58, %v992_v60  ;;  %v220_v34 = vcombine.low %v2150_v61, %v2151_v62  ;;  %v221_v35 = vcombine.high %v2150_v61, %v2151_v62 }
  0x1e   :  { %v222_v36 = vcombine.low %v2152_v9, %v2153_v10  ;;  %v223_v37 = vcombine.high %v2152_v9, %v2153_v10  ;;  %v224_v38 = vcombine.low %v2154_v11, %v2155_v22  ;;  %v226_v39 = vcombine.low %v2156_v23, %v2157_v25 }
  0x1f   :  { %v994_v40 = vcombine.high %v943_v53, %v957_v55  ;;  %v996_v41 = vcombine.high %v950_v54, %v964_v56  ;;  %v998_v42 = vcombine.high %v971_v57, %v985_v59  ;;  %v1000_v43 = vcombine.high %v978_v58, %v992_v60  ;;  %v1438_v58 = vld [vmem:[%s3353_s1] ss:$4 sm:$0xff] }
  0x20   :  { %v2481_v44 = vrot.slane %v993_v30, %v2306_v24  ;;  %v2484_v45 = vrot.slane %v995_v31, %v2306_v24  ;;  %v225_v46 = vcombine.high %v2154_v11, %v2155_v22  ;;  %v227_v17 = vcombine.high %v2156_v23, %v2157_v25  ;;  %v2204_v59 = vld [vmem:[%s3353_s1 + $0x20] ss:$4 sm:$0xff] }
  0x21   :  { %v2487_v16 = vrot.slane %v997_v32, %v2306_v24  ;;  %v2490_v61 = vrot.slane %v999_v33, %v2306_v24  ;;  %v234_v62 = vrot.slane %v220_v34, %v2306_v24  ;;  %v241_v53 = vrot.slane %v221_v35, %v2306_v24  ;;  %v2205_v22 = vld [vmem:[%s3353_s1 + $0x40] ss:$4 sm:$0xff] }
  0x22   :  { %v248_v54 = vrot.slane %v222_v36, %v2306_v24  ;;  %v255_v55 = vrot.slane %v223_v37, %v2306_v24  ;;  %v262_v56 = vrot.slane %v224_v38, %v2306_v24  ;;  %v276_v57 = vrot.slane %v226_v39, %v2306_v24  ;;  %v2206_v23 = vld [vmem:[%s3353_s1 + $0x60] ss:$4 sm:$0xff] }
  0x23   :  { %v2509_v10 = vrot.slane %v994_v40, %v2306_v24  ;;  %v2512_v11 = vrot.slane %v996_v41, %v2306_v24  ;;  %v2207_v25 = vld [vmem:[%s3353_s1 + $0x80] ss:$4 sm:$0xff]  ;;  %v2524_v30 = vrot.slane %v998_v42, %v2306_v24  ;;  %v2527_v31 = vrot.slane %v1000_v43, %v2306_v24 }
  0x24   :  { %v269_v32 = vrot.slane %v225_v46, %v2306_v24  ;;  %v283_v33 = vrot.slane %v227_v17, %v2306_v24  ;;  %v2208_v34 = vld [vmem:[%s3353_s1 + $0xa0] ss:$4 sm:$0xff]  ;;  %v284_v40 = vcombine.low %v234_v62, %v248_v54  ;;  %v285_v41 = vcombine.high %v234_v62, %v248_v54 }
  0x25   :  { %3427 = vst [vmem:[#allocation2_spill] sm:$0xff] %v2527_v31  ;;  %v2209_v35 = vld [vmem:[%s3353_s1 + $0xc0] ss:$4 sm:$0xff]  ;;  %v286_v42 = vcombine.low %v241_v53, %v255_v55  ;;  %v288_v43 = vcombine.low %v262_v56, %v276_v57  ;;  %v1459_v46 = vcombine.low %v1438_v58, %v2204_v59  ;;  %v1461_v9 = vcombine.low %v2205_v22, %v2206_v23 }
  0x26   :  { %v2210_v36 = vld [vmem:[%s3353_s1 + $0xe0] ss:$4 sm:$0xff]  ;;  %v1463_v60 = vcombine.low %v2207_v25, %v2208_v34  ;;  %v287_v13 = vcombine.high %v241_v53, %v255_v55  ;;  %v289_v28 = vcombine.high %v262_v56, %v276_v57  ;;  %v290_v37 = vcombine.low %v269_v32, %v283_v33 }
  0x27   :  { %v1465_v29 = vcombine.low %v2209_v35, %v2210_v36  ;;  %v291_v12 = vcombine.high %v269_v32, %v283_v33  ;;  %v1460_v6 = vcombine.high %v1438_v58, %v2204_v59  ;;  %v1462_v38 = vcombine.high %v2205_v22, %v2206_v23 }
  0x28   :  { %v1464_v26 = vcombine.high %v2207_v25, %v2208_v34  ;;  %v1466_v63 = vcombine.high %v2209_v35, %v2210_v36  ;;  %v2549_v17 = vrot.slane %v284_v40, %v2306_v24  ;;  %v2552_v39 = vrot.slane %v286_v42, %v2306_v24  ;;  %v2211_v34 = vld [vmem:[%s3353_s1 + $0x1] ss:$4 sm:$0xff] }
  0x29   :  { %v2555_v62 = vrot.slane %v285_v41, %v2306_v24  ;;  %v2558_v54 = vrot.slane %v288_v43, %v2306_v24  ;;  %v1473_v53 = vrot.slane %v1459_v46, %v2306_v24  ;;  %v1487_v55 = vrot.slane %v1461_v9, %v2306_v24  ;;  %v2212_v35 = vld [vmem:[%s3353_s1 + $0x21] ss:$4 sm:$0xff] }
  0x2a   :  { %3428 = vst [vmem:[#allocation3_spill] sm:$0xff] %v2549_v17  ;;  %3429 = vst [vmem:[#allocation4_spill] sm:$0xff] %v2552_v39  ;;  %v1501_v56 = vrot.slane %v1463_v60, %v2306_v24  ;;  %v1515_v57 = vrot.slane %v1465_v29, %v2306_v24  ;;  %v2565_v58 = vrot.slane %v287_v13, %v2306_v24  ;;  %v2213_v41 = vld [vmem:[%s3353_s1 + $0x41] ss:$4 sm:$0xff] }
  0x2b   :  { %3430 = vst [vmem:[#allocation5_spill] sm:$0xff] %v2555_v62  ;;  %3431 = vst [vmem:[#allocation6_spill] sm:$0xff] %v2558_v54  ;;  %v2568_v59 = vrot.slane %v290_v37, %v2306_v24  ;;  %v2571_v22 = vrot.slane %v289_v28, %v2306_v24  ;;  %v2574_v23 = vrot.slane %v291_v12, %v2306_v24  ;;  %v2214_v42 = vld [vmem:[%s3353_s1 + $0x61] ss:$4 sm:$0xff] }
  0x2c   :  { %3432 = vst [vmem:[#allocation7_spill] sm:$0xff] %v2565_v58  ;;  %v1480_v25 = vrot.slane %v1460_v6, %v2306_v24  ;;  %v1494_v9 = vrot.slane %v1462_v38, %v2306_v24  ;;  %v1508_v60 = vrot.slane %v1464_v26, %v2306_v24  ;;  %v1522_v29 = vrot.slane %v1466_v63, %v2306_v24  ;;  %v2215_v43 = vld [vmem:[%s3353_s1 + $0x81] ss:$4 sm:$0xff] }
  0x2d   :  { %3433 = vst [vmem:[#allocation8_spill] sm:$0xff] %v2568_v59  ;;  %3434 = vst [vmem:[#allocation9_spill] sm:$0xff] %v2571_v22  ;;  %v1523_v33 = vcombine.low %v1473_v53, %v1487_v55  ;;  %v1527_v63 = vcombine.low %v1501_v56, %v1515_v57  ;;  %v2216_v26 = vld [vmem:[%s3353_s1 + $0xa1] ss:$4 sm:$0xff]  ;;  %v1524_v12 = vcombine.high %v1473_v53, %v1487_v55 }
  0x2e   :  { %3435 = vst [vmem:[#allocation10_spill] sm:$0xff] %v2574_v23  ;;  %v1525_v36 = vcombine.low %v1480_v25, %v1494_v9  ;;  %v1529_v40 = vcombine.low %v1508_v60, %v1522_v29  ;;  %v2217_v38 = vld [vmem:[%s3353_s1 + $0xc1] ss:$4 sm:$0xff]  ;;  %v1526_v28 = vcombine.high %v1480_v25, %v1494_v9  ;;  %v1528_v46 = vcombine.high %v1501_v56, %v1515_v57  ;;  %v2158_v57 = vld [vmem:[%s3353_s1 + $0x2] ss:$4 sm:$0xff] }
  0x2f   :  { %v2218_v6 = vld [vmem:[%s3353_s1 + $0xe1] ss:$4 sm:$0xff]  ;;  %v1530_v32 = vcombine.high %v1508_v60, %v1522_v29  ;;  %v2629_v37 = vrot.slane %v1523_v33, %v2306_v24  ;;  %v2632_v13 = vrot.slane %v1527_v63, %v2306_v24  ;;  %v1631_v20 = vcombine.low %v2211_v34, %v2212_v35  ;;  %v2159_v25 = vld [vmem:[%s3353_s1 + $0x22] ss:$4 sm:$0xff] }
  0x30   :  { %v1632_v27 = vcombine.high %v2211_v34, %v2212_v35  ;;  %v1633_v19 = vcombine.low %v2213_v41, %v2214_v42  ;;  %v1634_v21 = vcombine.high %v2213_v41, %v2214_v42  ;;  %v1635_v18 = vcombine.low %v2215_v43, %v2216_v26  ;;  %v2161_v33 = vld [vmem:[%s3353_s1 + $0x62] ss:$4 sm:$0xff] }
  0x31   :  { %3436 = vst [vmem:[#allocation11_spill] sm:$0xff] %v2629_v37  ;;  %3437 = vst [vmem:[#allocation12_spill] sm:$0xff] %v2632_v13  ;;  %v1637_v23 = vcombine.low %v2217_v38, %v2218_v6  ;;  %v2635_v58 = vrot.slane %v1525_v36, %v2306_v24  ;;  %v2638_v53 = vrot.slane %v1529_v40, %v2306_v24  ;;  %v2163_v35 = vld [vmem:[%s3353_s1 + $0xa2] ss:$4 sm:$0xff] }
  0x32   :  { %v1636_v55 = vcombine.high %v2215_v43, %v2216_v26  ;;  %v1638_v56 = vcombine.high %v2217_v38, %v2218_v6  ;;  %v2647_v9 = vrot.slane %v1524_v12, %v2306_v24  ;;  %v2650_v60 = vrot.slane %v1526_v28, %v2306_v24  ;;  %v2160_v6 = vld [vmem:[%s3353_s1 + $0x42] ss:$4 sm:$0xff] }
  0x33   :  { %3438 = vst [vmem:[#allocation13_spill] sm:$0xff] %v2635_v58  ;;  %3439 = vst [vmem:[#allocation14_spill] sm:$0xff] %v2638_v53  ;;  %v2653_v29 = vrot.slane %v1528_v46, %v2306_v24  ;;  %v2656_v26 = vrot.slane %v1530_v32, %v2306_v24  ;;  %v2162_v12 = vld [vmem:[%s3353_s1 + $0x82] ss:$4 sm:$0xff]  ;;  %v1645_v32 = vrot.slane %v1631_v20, %v2306_v24 }
  0x34   :  { %v1652_v34 = vrot.slane %v1632_v27, %v2306_v24  ;;  %v2164_v36 = vld [vmem:[%s3353_s1 + $0xc2] ss:$4 sm:$0xff]  ;;  %v1659_v40 = vrot.slane %v1633_v19, %v2306_v24  ;;  %v1666_v41 = vrot.slane %v1634_v21, %v2306_v24  ;;  %v1673_v20 = vrot.slane %v1635_v18, %v2306_v24 }
  0x35   :  { %3440 = vst [vmem:[#allocation15_spill] sm:$0xff] %v2656_v26  ;;  %v2165_v38 = vld [vmem:[%s3353_s1 + $0xe2] ss:$4 sm:$0xff]  ;;  %v1687_v27 = vrot.slane %v1637_v23, %v2306_v24  ;;  %v1680_v46 = vrot.slane %v1636_v55, %v2306_v24  ;;  %v1694_v63 = vrot.slane %v1638_v56, %v2306_v24  ;;  %v408_v28 = vcombine.low %v2158_v57, %v2159_v25 }
  0x36   :  { %v410_v13 = vcombine.low %v2160_v6, %v2161_v33  ;;  %v412_v37 = vcombine.low %v2162_v12, %v2163_v35  ;;  %v414_v19 = vcombine.low %v2164_v36, %v2165_v38  ;;  %v409_v59 = vcombine.high %v2158_v57, %v2159_v25 }
  0x37   :  { %v411_v21 = vcombine.high %v2160_v6, %v2161_v33  ;;  %v413_v39 = vcombine.high %v2162_v12, %v2163_v35  ;;  %v415_v18 = vcombine.high %v2164_v36, %v2165_v38  ;;  %v1695_v22 = vcombine.low %v1645_v32, %v1659_v40  ;;  %v2195_v12 = vld [vmem:[%s3353_s1 + $0xe2] ss:$4 sm:$0xff] }
  0x38   :  { %v1696_v23 = vcombine.high %v1645_v32, %v1659_v40  ;;  %v1697_v62 = vcombine.low %v1652_v34, %v1666_v41  ;;  %v1699_v54 = vcombine.low %v1673_v20, %v1687_v27  ;;  %v1698_v42 = vcombine.high %v1652_v34, %v1666_v41  ;;  %v2189_v41 = vld [vmem:[%s3353_s1 + $0x22] ss:$4 sm:$0xff] }
  0x39   :  { %v1700_v17 = vcombine.high %v1673_v20, %v1687_v27  ;;  %v1701_v31 = vcombine.low %v1680_v46, %v1694_v63  ;;  %v1702_v43 = vcombine.high %v1680_v46, %v1694_v63  ;;  %v422_v55 = vrot.slane %v408_v28, %v2306_v24  ;;  %v2194_v28 = vld [vmem:[%s3353_s1 + $0xc2] ss:$4 sm:$0xff] }
  0x3a   :  { %v436_v56 = vrot.slane %v410_v13, %v2306_v24  ;;  %v450_v53 = vrot.slane %v412_v37, %v2306_v24  ;;  %v464_v58 = vrot.slane %v414_v19, %v2306_v24  ;;  %v429_v57 = vrot.slane %v409_v59, %v2306_v24 }
  0x3b   :  { %v443_v25 = vrot.slane %v411_v21, %v2306_v24  ;;  %v457_v6 = vrot.slane %v413_v39, %v2306_v24  ;;  %v471_v33 = vrot.slane %v415_v18, %v2306_v24  ;;  %v2705_v13 = vrot.slane %v1695_v22, %v2306_v24  ;;  %v2220_v21 = vld [vmem:[%s3353_s1 + $0x22] ss:$4 sm:$0xff] }
  0x3c   :  { %v2708_v37 = vrot.slane %v1699_v54, %v2306_v24  ;;  %v2715_v63 = vrot.slane %v1697_v62, %v2306_v24  ;;  %v2718_v32 = vrot.slane %v1701_v31, %v2306_v24  ;;  %v2721_v34 = vrot.slane %v1696_v23, %v2306_v24  ;;  %v2188_v23 = vld [vmem:[%s3353_s1 + $0x2] ss:$4 sm:$0xff] }
  0x3d   :  { %3441 = vst [vmem:[#allocation16_spill] sm:$0xff] %v2705_v13  ;;  %v2724_v22 = vrot.slane %v1700_v17, %v2306_v24  ;;  %v472_v54 = vcombine.low %v422_v55, %v436_v56  ;;  %v476_v35 = vcombine.low %v450_v53, %v464_v58  ;;  %v2727_v36 = vrot.slane %v1698_v42, %v2306_v24  ;;  %v2225_v42 = vld [vmem:[%s3353_s1 + $0xc2] ss:$4 sm:$0xff] }
  0x3e   :  { %3442 = vst [vmem:[#allocation17_spill] sm:$0xff] %v2708_v37  ;;  %3443 = vst [vmem:[#allocation18_spill] sm:$0xff] %v2715_v63  ;;  %v2730_v38 = vrot.slane %v1702_v43, %v2306_v24  ;;  %v474_v40 = vcombine.low %v429_v57, %v443_v25  ;;  %v478_v62 = vcombine.low %v457_v6, %v471_v33  ;;  %v2219_v43 = vld [vmem:[%s3353_s1 + $0x2] ss:$4 sm:$0xff] }
  0x3f   :  { %3444 = vst [vmem:[#allocation19_spill] sm:$0xff] %v2718_v32  ;;  %3445 = vst [vmem:[#allocation20_spill] sm:$0xff] %v2721_v34  ;;  %v473_v20 = vcombine.high %v422_v55, %v436_v56  ;;  %v475_v27 = vcombine.high %v429_v57, %v443_v25  ;;  %v477_v46 = vcombine.high %v450_v53, %v464_v58  ;;  %v2221_v53 = vld [vmem:[%s3353_s1 + $0x42] ss:$4 sm:$0xff] }
  0x40   :  { %3446 = vst [vmem:[#allocation21_spill] sm:$0xff] %v2724_v22  ;;  %3447 = vst [vmem:[#allocation22_spill] sm:$0xff] %v2727_v36  ;;  %v479_v19 = vcombine.high %v457_v6, %v471_v33  ;;  %v2751_v55 = vrot.slane %v472_v54, %v2306_v24  ;;  %v2754_v58 = vrot.slane %v476_v35, %v2306_v24  ;;  %v2222_v56 = vld [vmem:[%s3353_s1 + $0x62] ss:$4 sm:$0xff] }
  0x41   :  { %3448 = vst [vmem:[#allocation23_spill] sm:$0xff] %v2730_v38  ;;  %v2767_v6 = vrot.slane %v474_v40, %v2306_v24  ;;  %v2770_v33 = vrot.slane %v478_v62, %v2306_v24  ;;  %v2223_v54 = vld [vmem:[%s3353_s1 + $0x82] ss:$4 sm:$0xff]  ;;  %v2782_v25 = vrot.slane %v473_v20, %v2306_v24  ;;  %v2785_v40 = vrot.slane %v475_v27, %v2306_v24 }
  0x42   :  { %3449 = vst [vmem:[#allocation24_spill] sm:$0xff] %v2751_v55  ;;  %3450 = vst [vmem:[#allocation25_spill] sm:$0xff] %v2754_v58  ;;  %v2224_v35 = vld [vmem:[%s3353_s1 + $0xa2] ss:$4 sm:$0xff]  ;;  %v1811_v57 = vcombine.low %v2219_v43, %v2220_v21  ;;  %v1812_v17 = vcombine.high %v2219_v43, %v2220_v21  ;;  %v2797_v20 = vrot.slane %v477_v46, %v2306_v24 }
  0x43   :  { %3451 = vst [vmem:[#allocation26_spill] sm:$0xff] %v2767_v6  ;;  %3452 = vst [vmem:[#allocation27_spill] sm:$0xff] %v2770_v33  ;;  %v2226_v62 = vld [vmem:[%s3353_s1 + $0xe2] ss:$4 sm:$0xff]  ;;  %v2800_v27 = vrot.slane %v479_v19, %v2306_v24  ;;  %v1813_v18 = vcombine.low %v2221_v53, %v2222_v56  ;;  %v1814_v31 = vcombine.high %v2221_v53, %v2222_v56 }
  0x44   :  { %3453 = vst [vmem:[#allocation28_spill] sm:$0xff] %v2797_v20  ;;  %v2190_v43 = vld [vmem:[%s3353_s1 + $0x42] ss:$4 sm:$0xff]  ;;  %v1815_v59 = vcombine.low %v2223_v54, %v2224_v35  ;;  %v1816_v53 = vcombine.high %v2223_v54, %v2224_v35  ;;  %v1817_v58 = vcombine.low %v2225_v42, %v2226_v62  ;;  %v1818_v54 = vcombine.high %v2225_v42, %v2226_v62 }
  0x45   :  { %3454 = vst [vmem:[#allocation29_spill] sm:$0xff] %v2800_v27  ;;  %v2191_v21 = vld [vmem:[%s3353_s1 + $0x62] ss:$4 sm:$0xff]  ;;  %v1109_v35 = vcombine.low %v2188_v23, %v2189_v41  ;;  %v1110_v55 = vcombine.high %v2188_v23, %v2189_v41  ;;  %v1115_v22 = vcombine.low %v2194_v28, %v2195_v12  ;;  %v1116_v34 = vcombine.high %v2194_v28, %v2195_v12 }
  0x46   :  { %v2192_v39 = vld [vmem:[%s3353_s1 + $0x82] ss:$4 sm:$0xff]  ;;  %v1111_v38 = vcombine.low %v2190_v43, %v2191_v21  ;;  %v1112_v36 = vcombine.high %v2190_v43, %v2191_v21  ;;  %v1825_v37 = vrot.slane %v1811_v57, %v2306_v24  ;;  %v1832_v13 = vrot.slane %v1812_v17, %v2306_v24 }
  0x47   :  { %v2193_v56 = vld [vmem:[%s3353_s1 + $0xa2] ss:$4 sm:$0xff]  ;;  %v1839_v26 = vrot.slane %v1813_v18, %v2306_v24  ;;  %v1846_v46 = vrot.slane %v1814_v31, %v2306_v24  ;;  %v1853_v19 = vrot.slane %v1815_v59, %v2306_v24  ;;  %v1860_v42 = vrot.slane %v1816_v53, %v2306_v24 }
  0x48   :  { %v1113_v32 = vcombine.low %v2192_v39, %v2193_v56  ;;  %v1114_v63 = vcombine.high %v2192_v39, %v2193_v56  ;;  %v1867_v41 = vrot.slane %v1817_v58, %v2306_v24  ;;  %v1874_v23 = vrot.slane %v1818_v54, %v2306_v24 }
  0x49   :  { %v1123_v39 = vrot.slane %v1109_v35, %v2306_v24  ;;  %v1130_v12 = vrot.slane %v1110_v55, %v2306_v24  ;;  %v1137_v28 = vrot.slane %v1111_v38, %v2306_v24  ;;  %v1144_v17 = vrot.slane %v1112_v36, %v2306_v24 }
  0x4a   :  { %v1151_v18 = vrot.slane %v1113_v32, %v2306_v24  ;;  %v1158_v31 = vrot.slane %v1114_v63, %v2306_v24  ;;  %v1165_v59 = vrot.slane %v1115_v22, %v2306_v24  ;;  %v1172_v57 = vrot.slane %v1116_v34, %v2306_v24 }
  0x4b   :  { %v1875_v38 = vcombine.low %v1825_v37, %v1839_v26  ;;  %v1877_v32 = vcombine.low %v1832_v13, %v1846_v46  ;;  %v1879_v43 = vcombine.low %v1853_v19, %v1867_v41  ;;  %v1881_v63 = vcombine.low %v1860_v42, %v1874_v23 }
  0x4c   :  { %v1876_v21 = vcombine.high %v1825_v37, %v1839_v26  ;;  %v1878_v22 = vcombine.high %v1832_v13, %v1846_v46  ;;  %v1880_v53 = vcombine.high %v1853_v19, %v1867_v41  ;;  %v1882_v34 = vcombine.high %v1860_v42, %v1874_v23 }
  0x4d   :  { %v1173_v56 = vcombine.low %v1123_v39, %v1137_v28  ;;  %v1175_v54 = vcombine.low %v1130_v12, %v1144_v17  ;;  %v1177_v35 = vcombine.low %v1151_v18, %v1165_v59  ;;  %v1179_v58 = vcombine.low %v1158_v31, %v1172_v57 }
  0x4e   :  { %v1174_v33 = vcombine.high %v1123_v39, %v1137_v28  ;;  %v1176_v62 = vcombine.high %v1130_v12, %v1144_v17  ;;  %v1178_v6 = vcombine.high %v1151_v18, %v1165_v59  ;;  %v1180_v20 = vcombine.high %v1158_v31, %v1172_v57  ;;  %v3505_v57 = vld [vmem:[#allocation5_spill] sm:$0xff] }
  0x4f   :  { %v2853_v55 = vrot.slane %v1875_v38, %v2306_v24  ;;  %v2856_v36 = vrot.slane %v1877_v32, %v2306_v24  ;;  %v2859_v27 = vrot.slane %v1879_v43, %v2306_v24  ;;  %v2862_v26 = vrot.slane %v1881_v63, %v2306_v24 }
  0x50   :  { %v2865_v13 = vrot.slane %v1876_v21, %v2306_v24  ;;  %v2868_v37 = vrot.slane %v1878_v22, %v2306_v24  ;;  %v2871_v46 = vrot.slane %v1880_v53, %v2306_v24  ;;  %v2874_v19 = vrot.slane %v1882_v34, %v2306_v24 }
  0x51   :  { %v2877_v42 = vrot.slane %v1173_v56, %v2306_v24  ;;  %v2880_v41 = vrot.slane %v1175_v54, %v2306_v24  ;;  %v2883_v23 = vrot.slane %v1177_v35, %v2306_v24  ;;  %v2886_v39 = vrot.slane %v1179_v58, %v2306_v24 }
  0x52   :  { %v2889_v12 = vrot.slane %v1174_v33, %v2306_v24  ;;  %v2892_v28 = vrot.slane %v1176_v62, %v2306_v24  ;;  %v2895_v17 = vrot.slane %v1178_v6, %v2306_v24  ;;  %v2898_v18 = vrot.slane %v1180_v20, %v2306_v24  ;;  %v3506_v6 = vld [vmem:[#allocation9_spill] sm:$0xff] }
  0x53   :  { %3455 = vst [vmem:[#allocation30_spill] sm:$0xff] %v2877_v42  ;;  %3456 = vst [vmem:[#allocation31_spill] sm:$0xff] %v2880_v41  ;;  %v3463_v35 = vcombine.low %v2341_v0, %v2350_v3  ;;  %v3464_v22 = vcombine.low %v2347_v2, %v2356_v5  ;;  %v3466_v53 = vcombine.high %v2341_v0, %v2350_v3 }
  0x54   :  { %3457 = vst [vmem:[#allocation32_spill] sm:$0xff] %v2883_v23  ;;  %3458 = vst [vmem:[#allocation33_spill] sm:$0xff] %v2886_v39  ;;  %v3468_v56 = vcombine.high %v2347_v2, %v2356_v5  ;;  %v3470_v54 = vcombine.low %v2344_v1, %v2353_v4  ;;  %v3472_v62 = vcombine.low %v2367_v14, %v2370_v15 }
  0x55   :  { %3459 = vst [vmem:[#allocation34_spill] sm:$0xff] %v2889_v12  ;;  %3460 = vst [vmem:[#allocation35_spill] sm:$0xff] %v2892_v28  ;;  %v3474_v0 = vcombine.high %v2344_v1, %v2353_v4  ;;  %v3476_v2 = vcombine.high %v2367_v14, %v2370_v15  ;;  %v3481_v1 = vcombine.high %v2415_v49, %v2424_v52 }
  0x56   :  { %3461 = vst [vmem:[#allocation36_spill] sm:$0xff] %v2895_v17  ;;  %3462 = vst [vmem:[#allocation37_spill] sm:$0xff] %v2898_v18  ;;  %v3482_v14 = vcombine.low %v2412_v48, %v2421_v51  ;;  %v3507_v59 = vcombine.low %v3505_v57, %v3506_v6  ;;  %v3514_v18 = vld [vmem:[#allocation10_spill] sm:$0xff] }
  0x81   :  { %v747_v38 = vpop.permute.xlu1 %746  ;;  %v30_v32 = vpop.permute.xlu0 %29 }
  0x82   :  { %v2935_v63 = vmul.f32 %v3463_v35, %v747_v38  ;;  %v2940_v21 = vmul.f32 %v3464_v22, %v747_v38  ;;  %v2945_v34 = vmul.f32 %v3466_v53, %v747_v38  ;;  %v2950_v43 = vmul.f32 %v3468_v56, %v747_v38 }
  0x83   :  { %v2955_v35 = vmul.f32 %v3470_v54, %v747_v38  ;;  %v2960_v22 = vmul.f32 %v3472_v62, %v747_v38  ;;  %v2965_v3 = vmul.f32 %v3474_v0, %v747_v38  ;;  %v2970_v5 = vmul.f32 %v3476_v2, %v747_v38 }
  0x84   :  { %3465 = vst [vmem:[#allocation38_spill] sm:$0xff] %v2940_v21  ;;  %3467 = vst [vmem:[#allocation39_spill] sm:$0xff] %v2945_v34  ;;  %v3478_v53 = vcombine.low %v2409_v47, %v2418_v50  ;;  %v3479_v54 = vcombine.low %v2415_v49, %v2424_v52  ;;  %v3480_v62 = vcombine.high %v2409_v47, %v2418_v50 }
  0x85   :  { %3469 = vst [vmem:[#allocation40_spill] sm:$0xff] %v2950_v43  ;;  %3471 = vst [vmem:[#allocation41_spill] sm:$0xff] %v2955_v35  ;;  %v187_v4 = vmul.f32 %v3481_v1, %v30_v32  ;;  %v188_v15 = vmul.f32 %v3482_v14, %v30_v32  ;;  %v3483_v38 = vcombine.low %v2445_v7, %v2448_v8 }
  0x86   :  { %3473 = vst [vmem:[#allocation42_spill] sm:$0xff] %v2960_v22  ;;  %3475 = vst [vmem:[#allocation43_spill] sm:$0xff] %v2965_v3  ;;  %v184_v56 = vmul.f32 %v3478_v53, %v30_v32  ;;  %v185_v33 = vmul.f32 %v3479_v54, %v30_v32  ;;  %v186_v20 = vmul.f32 %v3480_v62, %v30_v32  ;;  %v919_v54 = vpop.permute.xlu1 %918  ;;  %v210_v62 = vpop.permute.xlu0 %209  ;;  %v3557_v3 = vld [vmem:[#allocation29_spill] sm:$0xff] }
  0x87   :  { %3477 = vst [vmem:[#allocation44_spill] sm:$0xff] %v2970_v5  ;;  %v189_v0 = vmul.f32 %v3483_v38, %v30_v32  ;;  %v3484_v2 = vcombine.high %v2412_v48, %v2421_v51  ;;  %v3485_v47 = vcombine.high %v2445_v7, %v2448_v8  ;;  %v3486_v49 = vcombine.low %v2481_v44, %v2487_v16 }
  0x88   :  { %v3487_v1 = vcombine.low %v2509_v10, %v2524_v30  ;;  %v3489_v48 = vcombine.high %v2481_v44, %v2487_v16  ;;  %v3491_v7 = vcombine.high %v2509_v10, %v2524_v30  ;;  %v3498_v16 = vcombine.high %v2484_v45, %v2490_v61 }
  0x89   :  { %v190_v53 = vmul.f32 %v3484_v2, %v30_v32  ;;  %v191_v50 = vmul.f32 %v3485_v47, %v30_v32  ;;  %v2999_v52 = vmul.f32 %v3486_v49, %v919_v54  ;;  %v3493_v32 = vcombine.low %v2484_v45, %v2490_v61  ;;  %v3495_v2 = vld [vmem:[#allocation2_spill] sm:$0xff] }
  0x8a   :  { %v3004_v14 = vmul.f32 %v3487_v1, %v919_v54  ;;  %v3009_v51 = vmul.f32 %v3489_v48, %v919_v54  ;;  %v3014_v8 = vmul.f32 %v3491_v7, %v919_v54  ;;  %v3496_v47 = vcombine.low %v2512_v11, %v3495_v2  ;;  %v3502_v1 = vld [vmem:[#allocation3_spill] sm:$0xff]  ;;  %v3503_v48 = vld [vmem:[#allocation6_spill] sm:$0xff] }
  0x8b   :  { %v3019_v38 = vmul.f32 %v3493_v32, %v919_v54  ;;  %v3029_v44 = vmul.f32 %v3498_v16, %v919_v54  ;;  %v3500_v10 = vcombine.high %v2512_v11, %v3495_v2  ;;  %v3504_v7 = vcombine.low %v3502_v1, %v3503_v48  ;;  %v3510_v16 = vld [vmem:[#allocation4_spill] sm:$0xff]  ;;  %v1621_v42 = vpop.permute.xlu0 %1620 }
  0x8c   :  { %3488 = vst [vmem:[#allocation45_spill] sm:$0xff] %v3004_v14  ;;  %3490 = vst [vmem:[#allocation46_spill] sm:$0xff] %v3009_v51  ;;  %v3024_v49 = vmul.f32 %v3496_v47, %v919_v54  ;;  %v365_v58 = vmul.f32 %v3507_v59, %v210_v62  ;;  %v3508_v47 = vcombine.high %v3502_v1, %v3503_v48  ;;  %v3511_v11 = vld [vmem:[#allocation8_spill] sm:$0xff] }
  0x8d   :  { %3492 = vst [vmem:[#allocation47_spill] sm:$0xff] %v3014_v8  ;;  %3494 = vst [vmem:[#allocation48_spill] sm:$0xff] %v3019_v38  ;;  %v3034_v30 = vmul.f32 %v3500_v10, %v919_v54  ;;  %v364_v32 = vmul.f32 %v3504_v7, %v210_v62  ;;  %v3509_v45 = vcombine.high %v3505_v57, %v3506_v6  ;;  %v3513_v10 = vld [vmem:[#allocation7_spill] sm:$0xff] }
  0x8e   :  { %3497 = vst [vmem:[#allocation2_spill] sm:$0xff] %v3024_v49  ;;  %3499 = vst [vmem:[#allocation49_spill] sm:$0xff] %v3029_v44  ;;  %v366_v31 = vmul.f32 %v3508_v47, %v210_v62  ;;  %v3512_v54 = vcombine.low %v3510_v16, %v3511_v11  ;;  %v3515_v28 = vcombine.low %v3513_v10, %v3514_v18 }
  0x8f   :  { %3501 = vst [vmem:[#allocation50_spill] sm:$0xff] %v3034_v30  ;;  %v367_v61 = vmul.f32 %v3509_v45, %v210_v62  ;;  %v3516_v39 = vcombine.high %v3510_v16, %v3511_v11  ;;  %v3517_v1 = vcombine.high %v3513_v10, %v3514_v18  ;;  %v372_v47 = vadd.f32 %v364_v32, %v184_v56  ;;  %v1449_v45 = vpop.permute.xlu1 %1448  ;;  %v3518_v30 = vld [vmem:[#allocation11_spill] sm:$0xff]  ;;  %v3524_v56 = vld [vmem:[#allocation13_spill] sm:$0xff]  ;;  %v3531_v32 = vld [vmem:[#allocation16_spill] sm:$0xff] }
  0x90   :  { %v368_v2 = vmul.f32 %v3512_v54, %v210_v62  ;;  %v369_v7 = vmul.f32 %v3515_v28, %v210_v62  ;;  %v373_v41 = vadd.f32 %v365_v58, %v185_v33  ;;  %v374_v57 = vadd.f32 %v366_v31, %v186_v20  ;;  %v3519_v28 = vld [vmem:[#allocation12_spill] sm:$0xff]  ;;  %v3535_v10 = vld [vmem:[#allocation21_spill] sm:$0xff] }
  0x91   :  { %v370_v59 = vmul.f32 %v3516_v39, %v210_v62  ;;  %v371_v48 = vmul.f32 %v3517_v1, %v210_v62  ;;  %v375_v6 = vadd.f32 %v367_v61, %v187_v4  ;;  %v3520_v5 = vcombine.low %v3518_v30, %v3519_v28  ;;  %v3525_v4 = vld [vmem:[#allocation14_spill] sm:$0xff]  ;;  %v3532_v61 = vld [vmem:[#allocation17_spill] sm:$0xff] }
  0x92   :  { %v376_v17 = vadd.f32 %v368_v2, %v188_v15  ;;  %v377_v12 = vadd.f32 %v369_v7, %v189_v0  ;;  %v3521_v39 = vcombine.low %v2647_v9, %v2653_v29  ;;  %v3522_v31 = vcombine.high %v3518_v30, %v3519_v28  ;;  %v3527_v0 = vld [vmem:[#allocation15_spill] sm:$0xff]  ;;  %v3534_v2 = vld [vmem:[#allocation20_spill] sm:$0xff] }
  0x93   :  { %v378_v54 = vadd.f32 %v370_v59, %v190_v53  ;;  %v379_v23 = vadd.f32 %v371_v48, %v191_v50  ;;  %v3063_v44 = vmul.f32 %v3520_v5, %v1449_v45  ;;  %v3523_v58 = vcombine.high %v2647_v9, %v2653_v29 }
  0x94   :  { %v3068_v18 = vmul.f32 %v3521_v39, %v1449_v45  ;;  %v3073_v33 = vmul.f32 %v3522_v31, %v1449_v45  ;;  %v3526_v15 = vcombine.low %v3524_v56, %v3525_v4  ;;  %v3528_v53 = vcombine.low %v2650_v60, %v3527_v0  ;;  %v3539_v31 = vld [vmem:[#allocation18_spill] sm:$0xff] }
  0x95   :  { %v3078_v20 = vmul.f32 %v3523_v58, %v1449_v45  ;;  %v3529_v62 = vcombine.high %v3524_v56, %v3525_v4  ;;  %v3530_v9 = vcombine.high %v2650_v60, %v3527_v0  ;;  %v3533_v16 = vcombine.low %v3531_v32, %v3532_v61  ;;  %v3540_v60 = vld [vmem:[#allocation19_spill] sm:$0xff]  ;;  %v3542_v56 = vld [vmem:[#allocation22_spill] sm:$0xff] }
  0x96   :  { %v3083_v5 = vmul.f32 %v3526_v15, %v1449_v45  ;;  %v3088_v50 = vmul.f32 %v3528_v53, %v1449_v45  ;;  %v3536_v7 = vcombine.low %v3534_v2, %v3535_v10  ;;  %v3537_v1 = vcombine.high %v3531_v32, %v3532_v61  ;;  %v3543_v4 = vld [vmem:[#allocation23_spill] sm:$0xff]  ;;  %v398_v61 = vpop.permute.xlu1 %397 }
  0x97   :  { %v3093_v30 = vmul.f32 %v3529_v62, %v1449_v45  ;;  %v3098_v29 = vmul.f32 %v3530_v9, %v1449_v45  ;;  %v1775_v11 = vmul.f32 %v3533_v16, %v1621_v42  ;;  %v3538_v28 = vcombine.high %v3534_v2, %v3535_v10  ;;  %v3547_v16 = vld [vmem:[#allocation24_spill] sm:$0xff]  ;;  %v3548_v2 = vld [vmem:[#allocation25_spill] sm:$0xff] }
  0x98   :  { %v1776_v59 = vmul.f32 %v3536_v7, %v1621_v42  ;;  %v1777_v48 = vmul.f32 %v3537_v1, %v1621_v42  ;;  %v3541_v45 = vcombine.low %v3539_v31, %v3540_v60  ;;  %v3544_v15 = vcombine.low %v3542_v56, %v3543_v4  ;;  %v3550_v1 = vld [vmem:[#allocation28_spill] sm:$0xff] }
  0x99   :  { %v1778_v39 = vmul.f32 %v3538_v28, %v1621_v42  ;;  %v3545_v53 = vcombine.high %v3539_v31, %v3540_v60  ;;  %v3546_v9 = vcombine.high %v3542_v56, %v3543_v4  ;;  %v3549_v10 = vcombine.low %v3547_v16, %v3548_v2  ;;  %v3554_v56 = vld [vmem:[#allocation26_spill] sm:$0xff] }
  0x9a   :  { %v3115_v58 = vmul.f32 %v3541_v45, %v1621_v42  ;;  %v3120_v0 = vmul.f32 %v3544_v15, %v1621_v42  ;;  %v3551_v28 = vcombine.low %v2782_v25, %v3550_v1  ;;  %v3552_v15 = vcombine.high %v3547_v16, %v3548_v2 }
  0x9b   :  { %v3125_v62 = vmul.f32 %v3545_v53, %v1621_v42  ;;  %v3130_v32 = vmul.f32 %v3546_v9, %v1621_v42  ;;  %v552_v7 = vmul.f32 %v3549_v10, %v398_v61  ;;  %v3553_v60 = vcombine.high %v2782_v25, %v3550_v1  ;;  %v3555_v42 = vld [vmem:[#allocation27_spill] sm:$0xff] }
  0x9c   :  { %v553_v45 = vmul.f32 %v3551_v28, %v398_v61  ;;  %v554_v31 = vmul.f32 %v3552_v15, %v398_v61  ;;  %v3556_v4 = vcombine.low %v3554_v56, %v3555_v42  ;;  %v3558_v49 = vcombine.low %v2785_v40, %v3557_v3 }
  0x9d   :  { %v555_v53 = vmul.f32 %v3553_v60, %v398_v61  ;;  %v3559_v22 = vcombine.high %v3554_v56, %v3555_v42  ;;  %v3560_v16 = vcombine.high %v2785_v40, %v3557_v3  ;;  %v560_v15 = vadd.f32 %v552_v7, %v372_v47 }
  0x9e   :  { %v556_v9 = vmul.f32 %v3556_v4, %v398_v61  ;;  %v557_v10 = vmul.f32 %v3558_v49, %v398_v61  ;;  %v561_v38 = vadd.f32 %v553_v45, %v373_v41  ;;  %v562_v25 = vadd.f32 %v554_v31, %v374_v57 }
  0x9f   :  { %v558_v28 = vmul.f32 %v3559_v22, %v398_v61  ;;  %v559_v2 = vmul.f32 %v3560_v16, %v398_v61  ;;  %v563_v1 = vadd.f32 %v555_v53, %v375_v6  ;;  %v1786_v16 = vadd.f32 %v1778_v39, %v3078_v20 }
  0xa0   :  { %v564_v60 = vadd.f32 %v556_v9, %v376_v17  ;;  %v565_v35 = vadd.f32 %v557_v10, %v377_v12  ;;  %v576_v43 = vcombine.low %v560_v15, %v561_v38  ;;  %v577_v51 = vcombine.high %v560_v15, %v561_v38 }
  0xa1   :  { %v566_v8 = vadd.f32 %v558_v28, %v378_v54  ;;  %v567_v4 = vadd.f32 %v559_v2, %v379_v23  ;;  %v578_v34 = vcombine.low %v562_v25, %v563_v1  ;;  %v579_v49 = vcombine.high %v562_v25, %v563_v1 }
  0xa2   :  { %v580_v14 = vcombine.low %v564_v60, %v565_v35  ;;  %v581_v21 = vcombine.high %v564_v60, %v565_v35  ;;  %v590_v42 = vrot.slane %v576_v43, %v2306_v24  ;;  %v597_v40 = vrot.slane %v577_v51, %v2306_v24  ;;  %v1801_v60 = vpop.permute.xlu0 %1800 }
  0xa3   :  { %v582_v56 = vcombine.low %v566_v8, %v567_v4  ;;  %v583_v22 = vcombine.high %v566_v8, %v567_v4  ;;  %v604_v41 = vrot.slane %v578_v34, %v2306_v24  ;;  %v611_v3 = vrot.slane %v579_v49, %v2306_v24 }
  0xa4   :  { %v618_v12 = vrot.slane %v580_v14, %v2306_v24  ;;  %v625_v23 = vrot.slane %v581_v21, %v2306_v24  ;;  %v1783_v9 = vadd.f32 %v1775_v11, %v3063_v44  ;;  %v1784_v10 = vadd.f32 %v1776_v59, %v3068_v18 }
  0xa5   :  { %v632_v17 = vrot.slane %v582_v56, %v2306_v24  ;;  %v639_v38 = vrot.slane %v583_v22, %v2306_v24  ;;  %v640_v47 = vcombine.low %v590_v42, %v604_v41  ;;  %v641_v35 = vcombine.high %v590_v42, %v604_v41 }
  0xa6   :  { %v642_v57 = vcombine.low %v597_v40, %v611_v3  ;;  %v643_v8 = vcombine.high %v597_v40, %v611_v3  ;;  %v1785_v28 = vadd.f32 %v1777_v48, %v3073_v33  ;;  %v1787_v44 = vadd.f32 %v3115_v58, %v3083_v5 }
  0xa7   :  { %v644_v6 = vcombine.low %v618_v12, %v632_v17  ;;  %v645_v43 = vcombine.high %v618_v12, %v632_v17  ;;  %v646_v54 = vcombine.low %v625_v23, %v639_v38  ;;  %v647_v51 = vcombine.high %v625_v23, %v639_v38 }
  0xa8   :  { %v654_v34 = vrot.slane %v640_v47, %v2306_v24  ;;  %v661_v61 = vrot.slane %v642_v57, %v2306_v24  ;;  %v668_v14 = vrot.slane %v641_v35, %v2306_v24  ;;  %v675_v21 = vrot.slane %v643_v8, %v2306_v24 }
  0xa9   :  { %v682_v7 = vrot.slane %v644_v6, %v2306_v24  ;;  %v689_v45 = vrot.slane %v646_v54, %v2306_v24  ;;  %v696_v31 = vrot.slane %v645_v43, %v2306_v24  ;;  %v703_v53 = vrot.slane %v647_v51, %v2306_v24 }
  0xaa   :  { %v1788_v18 = vadd.f32 %v3120_v0, %v3088_v50  ;;  %v1789_v33 = vadd.f32 %v3125_v62, %v3093_v30  ;;  %v1790_v20 = vadd.f32 %v3130_v32, %v3098_v29  ;;  %v3561_v5 = vcombine.low %v2853_v55, %v2859_v27 }
  0xab   :  { %v704_v2 = vcombine.low %v654_v34, %v682_v7  ;;  %v705_v15 = vcombine.high %v654_v34, %v682_v7  ;;  %v706_v25 = vcombine.low %v661_v61, %v689_v45  ;;  %v707_v1 = vcombine.high %v661_v61, %v689_v45 }
  0xac   :  { %v708_v4 = vcombine.low %v668_v14, %v696_v31  ;;  %v709_v49 = vcombine.high %v668_v14, %v696_v31  ;;  %v710_v56 = vcombine.low %v675_v21, %v703_v53  ;;  %v711_v22 = vcombine.high %v675_v21, %v703_v53 }
  0xad   :  { %720 = vst [vmem:[%s3354_s2] ss:$4 sm:$0xff] %v704_v2  ;;  %2167 = vst [vmem:[%s3354_s2 + $0x40] ss:$4 sm:$0xff] %v705_v15  ;;  %v1955_v50 = vmul.f32 %v3561_v5, %v1801_v60  ;;  %v3562_v30 = vcombine.low %v2865_v13, %v2871_v46  ;;  %v3563_v11 = vcombine.high %v2853_v55, %v2859_v27  ;;  %v3572_v5 = vld [vmem:[#allocation46_spill] sm:$0xff] }
  0xae   :  { %2169 = vst [vmem:[%s3354_s2 + $0x80] ss:$4 sm:$0xff] %v706_v25  ;;  %2171 = vst [vmem:[%s3354_s2 + $0xc0] ss:$4 sm:$0xff] %v707_v1  ;;  %v3564_v48 = vcombine.high %v2865_v13, %v2871_v46  ;;  %v3565_v58 = vcombine.low %v2856_v36, %v2862_v26  ;;  %v3566_v62 = vcombine.low %v2868_v37, %v2874_v19 }
  0xaf   :  { %2166 = vst [vmem:[%s3354_s2 + $0x20] ss:$4 sm:$0xff] %v708_v4  ;;  %2168 = vst [vmem:[%s3354_s2 + $0x60] ss:$4 sm:$0xff] %v709_v49  ;;  %v1956_v29 = vmul.f32 %v3562_v30, %v1801_v60  ;;  %v1957_v59 = vmul.f32 %v3563_v11, %v1801_v60  ;;  %v3567_v42 = vcombine.high %v2856_v36, %v2862_v26  ;;  %v3573_v30 = vld [vmem:[#allocation40_spill] sm:$0xff] }
  0xb0   :  { %2170 = vst [vmem:[%s3354_s2 + $0xa0] ss:$4 sm:$0xff] %v710_v56  ;;  %2172 = vst [vmem:[%s3354_s2 + $0xe0] ss:$4 sm:$0xff] %v711_v22  ;;  %v1958_v39 = vmul.f32 %v3564_v48, %v1801_v60  ;;  %v1959_v0 = vmul.f32 %v3565_v58, %v1801_v60  ;;  %v1960_v32 = vmul.f32 %v3566_v62, %v1801_v60 }
  0xb1   :  { %v1961_v40 = vmul.f32 %v3567_v42, %v1801_v60  ;;  %v3568_v27 = vcombine.high %v2868_v37, %v2874_v19  ;;  %v1963_v41 = vadd.f32 %v1955_v50, %v1783_v9  ;;  %v1964_v3 = vadd.f32 %v1956_v29, %v1784_v10  ;;  %v3574_v29 = vld [vmem:[#allocation47_spill] sm:$0xff] }
  0xb2   :  { %v1965_v13 = vadd.f32 %v1957_v59, %v1785_v28  ;;  %v1966_v46 = vadd.f32 %v1958_v39, %v1786_v16  ;;  %v1967_v12 = vadd.f32 %v1959_v0, %v1787_v44  ;;  %v1968_v23 = vadd.f32 %v1960_v32, %v1788_v18  ;;  %v3569_v44 = vld [vmem:[#allocation38_spill] sm:$0xff]  ;;  %v3570_v18 = vld [vmem:[#allocation45_spill] sm:$0xff]  ;;  %v1099_v0 = vpop.permute.xlu1 %1098 }
  0xb3   :  { %v1962_v55 = vmul.f32 %v3568_v27, %v1801_v60  ;;  %v1969_v17 = vadd.f32 %v1961_v40, %v1789_v33  ;;  %v1979_v47 = vcombine.low %v1963_v41, %v1964_v3  ;;  %v1980_v35 = vcombine.high %v1963_v41, %v1964_v3  ;;  %v3578_v41 = vld [vmem:[#allocation2_spill] sm:$0xff] }
  0xb4   :  { %v1981_v57 = vcombine.low %v1965_v13, %v1966_v46  ;;  %v1982_v8 = vcombine.high %v1965_v13, %v1966_v46  ;;  %v1983_v6 = vcombine.low %v1967_v12, %v1968_v23  ;;  %v1984_v43 = vcombine.high %v1967_v12, %v1968_v23  ;;  %v3579_v13 = vld [vmem:[#allocation43_spill] sm:$0xff]  ;;  %v3580_v46 = vld [vmem:[#allocation49_spill] sm:$0xff]  ;;  %v3581_v23 = vld [vmem:[#allocation44_spill] sm:$0xff] }
  0xb5   :  { %v1970_v38 = vadd.f32 %v1962_v55, %v1790_v20  ;;  %v1993_v54 = vrot.slane %v1979_v47, %v2306_v24  ;;  %v2000_v37 = vrot.slane %v1980_v35, %v2306_v24  ;;  %v1081_v22 = vadd.f32 %v2999_v52, %v2935_v63  ;;  %v3571_v20 = vld [vmem:[#allocation39_spill] sm:$0xff]  ;;  %v3575_v63 = vld [vmem:[#allocation41_spill] sm:$0xff]  ;;  %v3576_v52 = vld [vmem:[#allocation48_spill] sm:$0xff] }
  0xb6   :  { %v2007_v19 = vrot.slane %v1981_v57, %v2306_v24  ;;  %v2014_v51 = vrot.slane %v1982_v8, %v2306_v24  ;;  %v2021_v34 = vrot.slane %v1983_v6, %v2306_v24  ;;  %v2028_v61 = vrot.slane %v1984_v43, %v2306_v24  ;;  %v3577_v55 = vld [vmem:[#allocation42_spill] sm:$0xff]  ;;  %v3584_v35 = vld [vmem:[#allocation32_spill] sm:$0xff] }
  0xb7   :  { %v1985_v36 = vcombine.low %v1969_v17, %v1970_v38  ;;  %v1986_v26 = vcombine.high %v1969_v17, %v1970_v38  ;;  %v1082_v33 = vadd.f32 %v3570_v18, %v3569_v44  ;;  %v1083_v50 = vadd.f32 %v3572_v5, %v3571_v20  ;;  %v3582_v17 = vld [vmem:[#allocation50_spill] sm:$0xff]  ;;  %v3587_v43 = vld [vmem:[#allocation36_spill] sm:$0xff] }
  0xb8   :  { %v2043_v7 = vcombine.low %v1993_v54, %v2007_v19  ;;  %v2044_v45 = vcombine.high %v1993_v54, %v2007_v19  ;;  %v2045_v31 = vcombine.low %v2000_v37, %v2014_v51  ;;  %v2046_v53 = vcombine.high %v2000_v37, %v2014_v51  ;;  %v3583_v47 = vld [vmem:[#allocation30_spill] sm:$0xff] }
  0xb9   :  { %v2035_v14 = vrot.slane %v1985_v36, %v2306_v24  ;;  %v2042_v21 = vrot.slane %v1986_v26, %v2306_v24  ;;  %v1084_v11 = vadd.f32 %v3574_v29, %v3573_v30  ;;  %v1085_v27 = vadd.f32 %v3576_v52, %v3575_v63  ;;  %v3586_v6 = vld [vmem:[#allocation34_spill] sm:$0xff] }
  0xba   :  { %v2057_v2 = vrot.slane %v2043_v7, %v2306_v24  ;;  %v2064_v15 = vrot.slane %v2045_v31, %v2306_v24  ;;  %v2071_v25 = vrot.slane %v2044_v45, %v2306_v24  ;;  %v2078_v1 = vrot.slane %v2046_v53, %v2306_v24  ;;  %v3594_v7 = vld [vmem:[#allocation35_spill] sm:$0xff]  ;;  %v3595_v45 = vld [vmem:[#allocation37_spill] sm:$0xff] }
  0xbb   :  { %v2047_v9 = vcombine.low %v2021_v34, %v2035_v14  ;;  %v2048_v10 = vcombine.high %v2021_v34, %v2035_v14  ;;  %v2049_v28 = vcombine.low %v2028_v61, %v2042_v21  ;;  %v2050_v16 = vcombine.high %v2028_v61, %v2042_v21  ;;  %v3591_v34 = vld [vmem:[#allocation31_spill] sm:$0xff]  ;;  %v3592_v61 = vld [vmem:[#allocation33_spill] sm:$0xff] }
  0xbc   :  { %v1086_v3 = vadd.f32 %v3578_v41, %v3577_v55  ;;  %v1087_v12 = vadd.f32 %v3580_v46, %v3579_v13  ;;  %v1088_v38 = vadd.f32 %v3582_v17, %v3581_v23  ;;  %v3585_v57 = vcombine.low %v3583_v47, %v3584_v35 }
  0xbd   :  { %v2085_v60 = vrot.slane %v2047_v9, %v2306_v24  ;;  %v2092_v4 = vrot.slane %v2049_v28, %v2306_v24  ;;  %v2099_v49 = vrot.slane %v2048_v10, %v2306_v24  ;;  %v2106_v56 = vrot.slane %v2050_v16, %v2306_v24 }
  0xbe   :  { %v1253_v8 = vmul.f32 %v3585_v57, %v1099_v0  ;;  %v3588_v36 = vcombine.low %v3586_v6, %v3587_v43  ;;  %v3589_v54 = vcombine.high %v3583_v47, %v3584_v35  ;;  %v3590_v19 = vcombine.high %v3586_v6, %v3587_v43 }
  0xbf   :  { %v2107_v59 = vcombine.low %v2057_v2, %v2085_v60  ;;  %v2108_v48 = vcombine.high %v2057_v2, %v2085_v60  ;;  %v2109_v39 = vcombine.low %v2064_v15, %v2092_v4  ;;  %v2110_v58 = vcombine.high %v2064_v15, %v2092_v4 }
  0xc0   :  { %v2111_v62 = vcombine.low %v2071_v25, %v2099_v49  ;;  %v2112_v32 = vcombine.high %v2071_v25, %v2099_v49  ;;  %v2113_v42 = vcombine.low %v2078_v1, %v2106_v56  ;;  %v2114_v40 = vcombine.high %v2078_v1, %v2106_v56 }
  0xc1   :  { %2227 = vst [vmem:[%s3354_s2 + $0x2] ss:$4 sm:$0xff] %v2107_v59  ;;  %2229 = vst [vmem:[%s3354_s2 + $0x42] ss:$4 sm:$0xff] %v2108_v48  ;;  %v1254_v26 = vmul.f32 %v3588_v36, %v1099_v0  ;;  %v1255_v37 = vmul.f32 %v3589_v54, %v1099_v0  ;;  %v1256_v51 = vmul.f32 %v3590_v19, %v1099_v0 }
  0xc2   :  { %2231 = vst [vmem:[%s3354_s2 + $0x82] ss:$4 sm:$0xff] %v2109_v39  ;;  %2233 = vst [vmem:[%s3354_s2 + $0xc2] ss:$4 sm:$0xff] %v2110_v58  ;;  %v3593_v14 = vcombine.low %v3591_v34, %v3592_v61  ;;  %v3596_v31 = vcombine.low %v3594_v7, %v3595_v45  ;;  %v3597_v9 = vcombine.high %v3591_v34, %v3592_v61 }
  0xc3   :  { %2228 = vst [vmem:[%s3354_s2 + $0x22] ss:$4 sm:$0xff] %v2111_v62  ;;  %2230 = vst [vmem:[%s3354_s2 + $0x62] ss:$4 sm:$0xff] %v2112_v32  ;;  %v3598_v28 = vcombine.high %v3594_v7, %v3595_v45  ;;  %v1261_v2 = vadd.f32 %v1253_v8, %v1081_v22  ;;  %v1262_v15 = vadd.f32 %v1254_v26, %v1082_v33 }
  0xc4   :  { %2232 = vst [vmem:[%s3354_s2 + $0xa2] ss:$4 sm:$0xff] %v2113_v42  ;;  %2234 = vst [vmem:[%s3354_s2 + $0xe2] ss:$4 sm:$0xff] %v2114_v40  ;;  %v1257_v21 = vmul.f32 %v3593_v14, %v1099_v0  ;;  %v1258_v53 = vmul.f32 %v3596_v31, %v1099_v0  ;;  %v1259_v10 = vmul.f32 %v3597_v9, %v1099_v0 }
  0xc5   :  { %v1260_v16 = vmul.f32 %v3598_v28, %v1099_v0  ;;  %v1263_v25 = vadd.f32 %v1255_v37, %v1083_v50  ;;  %v1264_v1 = vadd.f32 %v1256_v51, %v1084_v11  ;;  %v1277_v44 = vcombine.low %v1261_v2, %v1262_v15 }
  0xc6   :  { %v1265_v60 = vadd.f32 %v1257_v21, %v1085_v27  ;;  %v1266_v4 = vadd.f32 %v1258_v53, %v1086_v3  ;;  %v1267_v49 = vadd.f32 %v1259_v10, %v1087_v12  ;;  %v1278_v18 = vcombine.high %v1261_v2, %v1262_v15 }
  0xc7   :  { %v1268_v56 = vadd.f32 %v1260_v16, %v1088_v38  ;;  %v1279_v20 = vcombine.low %v1263_v25, %v1264_v1  ;;  %v1280_v5 = vcombine.high %v1263_v25, %v1264_v1  ;;  %v1291_v39 = vrot.slane %v1277_v44, %v2306_v24 }
  0xc8   :  { %v1281_v30 = vcombine.low %v1265_v60, %v1266_v4  ;;  %v1282_v29 = vcombine.high %v1265_v60, %v1266_v4  ;;  %v1298_v58 = vrot.slane %v1278_v18, %v2306_v24 }
  0xc9   :  { %v1283_v59 = vcombine.low %v1267_v49, %v1268_v56  ;;  %v1284_v48 = vcombine.high %v1267_v49, %v1268_v56  ;;  %v1305_v22 = vrot.slane %v1279_v20, %v2306_v24  ;;  %v1312_v33 = vrot.slane %v1280_v5, %v2306_v24 }
  0xca   :  { %v1319_v50 = vrot.slane %v1281_v30, %v2306_v24  ;;  %v1326_v11 = vrot.slane %v1282_v29, %v2306_v24 }
  0xcb   :  { %v1333_v0 = vrot.slane %v1283_v59, %v2306_v24  ;;  %v1340_v62 = vrot.slane %v1284_v48, %v2306_v24  ;;  %v1341_v32 = vcombine.low %v1291_v39, %v1305_v22  ;;  %v1342_v42 = vcombine.high %v1291_v39, %v1305_v22 }
  0xcc   :  { %v1343_v40 = vcombine.low %v1298_v58, %v1312_v33  ;;  %v1344_v63 = vcombine.high %v1298_v58, %v1312_v33 }
  0xcd   :  { %v1345_v52 = vcombine.low %v1319_v50, %v1333_v0  ;;  %v1346_v27 = vcombine.high %v1319_v50, %v1333_v0  ;;  %v1347_v55 = vcombine.low %v1326_v11, %v1340_v62  ;;  %v1348_v41 = vcombine.high %v1326_v11, %v1340_v62 }
  0xce   :  { %v1355_v3 = vrot.slane %v1341_v32, %v2306_v24  ;;  %v1362_v13 = vrot.slane %v1343_v40, %v2306_v24  ;;  %v1369_v46 = vrot.slane %v1342_v42, %v2306_v24  ;;  %v1376_v12 = vrot.slane %v1344_v63, %v2306_v24 }
  0xcf   :  { %v1383_v23 = vrot.slane %v1345_v52, %v2306_v24  ;;  %v1390_v17 = vrot.slane %v1347_v55, %v2306_v24  ;;  %v1397_v38 = vrot.slane %v1346_v27, %v2306_v24  ;;  %v1404_v47 = vrot.slane %v1348_v41, %v2306_v24 }
  0xd1   :  { %v1405_v35 = vcombine.low %v1355_v3, %v1383_v23  ;;  %v1406_v57 = vcombine.high %v1355_v3, %v1383_v23  ;;  %v1407_v8 = vcombine.low %v1362_v13, %v1390_v17  ;;  %v1408_v6 = vcombine.high %v1362_v13, %v1390_v17 }
  0xd2   :  { %v1409_v43 = vcombine.low %v1369_v46, %v1397_v38  ;;  %v1410_v36 = vcombine.high %v1369_v46, %v1397_v38  ;;  %v1411_v26 = vcombine.low %v1376_v12, %v1404_v47  ;;  %v1412_v54 = vcombine.high %v1376_v12, %v1404_v47 }
  0xd3   :  { %2196 = vst [vmem:[%s3354_s2 + $0x1] ss:$4 sm:$0xff] %v1405_v35  ;;  %2198 = vst [vmem:[%s3354_s2 + $0x41] ss:$4 sm:$0xff] %v1406_v57 }
  0xd4   :  { %2200 = vst [vmem:[%s3354_s2 + $0x81] ss:$4 sm:$0xff] %v1407_v8  ;;  %2202 = vst [vmem:[%s3354_s2 + $0xc1] ss:$4 sm:$0xff] %v1408_v6 }
  0xd5   :  { %2197 = vst [vmem:[%s3354_s2 + $0x21] ss:$4 sm:$0xff] %v1409_v43  ;;  %2199 = vst [vmem:[%s3354_s2 + $0x61] ss:$4 sm:$0xff] %v1410_v36 }
  0xd6   :  { %2201 = vst [vmem:[%s3354_s2 + $0xa1] ss:$4 sm:$0xff] %v1411_v26  ;;  %2203 = vst [vmem:[%s3354_s2 + $0xe1] ss:$4 sm:$0xff] %v1412_v54 }

</bundles_post_ra>
